<compile_context>
chip_gen: v7x
topology: tpu7x:2x2x1
jax: 0.10.0
libtpu: 0.0.40
codegen_flags: <defaults>
</compile_context>

<pallas_src>
import functools

import jax
import jax.numpy as jnp
from jax.experimental import pallas as pl
from jax.experimental.pallas import tpu as pltpu

_MIN_PALLAS_BYTES = 1 << 20      # below ~1 MiB total, plain XLA add (fusable) wins
_SMALL_IMAGE_BYTES = 256 << 10   # C*HW*elem <= this -> flatten 4-D to (N, C*HW)
_VMEM_LIMIT_BYTES = 32 << 20     # raises v5e's 16 MiB default scoped VMEM


def _round_up(v, m):
    return ((v + m - 1) // m) * m


def _round_down(v, m):
    return (v // m) * m


@functools.lru_cache(maxsize=None)
def _target_block_bytes():
    """~2 MiB blocks everywhere; ~4 MiB on 128-MiB-VMEM chips (v5e/v6e)."""
    target = 2 << 20
    try:
        info = pltpu.get_tpu_info()
        if getattr(info, "vmem_capacity_bytes", 0) >= (100 << 20):
            target = 4 << 20
    except Exception:  # best-effort hardware probe; 2 MiB is safe on all chips
        pass
    return target


# ---------------------------------------------------------------------------
# Kernels
# ---------------------------------------------------------------------------
def _row_bias_kernel(b_ref, x_ref, o_ref):
    # b_ref: (1, l_blk); x_ref/o_ref: (r_blk, l_blk). Single VPU add, lane-dense.
    o_ref[...] = x_ref[...] + b_ref[...]


def _chan_bias_kernel(b_ref, x_ref, o_ref):
    # b_ref: (c_blk, 1); x_ref/o_ref: (n_blk, c_blk, hw_blk).
    o_ref[...] = x_ref[...] + b_ref[...][None]          # (1, c_blk, 1) broadcast


# ---------------------------------------------------------------------------
# Blocked pallas_call wrappers
# ---------------------------------------------------------------------------
def _row_blocked_add(x2, bias_row):
    """x2: (R, L), bias_row: (1, L); out = x2 + bias_row with ~target-byte blocks."""
    R, L = x2.shape
    elem = jnp.dtype(x2.dtype).itemsize
    budget = max(1024, _target_block_bytes() // elem)   # elements per block
    l_pad = _round_up(L, 128)

    if 8 * l_pad > budget:
        # Even 8 sublanes of the full row blow the budget: block the lane dim.
        l_blk = max(128, _round_down(budget // 8, 128))
        r_blk = R if R < 8 else 8
    else:
        l_blk = L                                       # full, lane-dense rows
        rows = budget // l_pad                          # >= 8 here
        r_blk = R if rows >= R else max(8, _round_down(rows, 8))

    grid = (pl.cdiv(L, l_blk), pl.cdiv(R, r_blk))       # rows inner: bias resident
    return pl.pallas_call(
        _row_bias_kernel,
        out_shape=jax.ShapeDtypeStruct((R, L), x2.dtype),
        grid=grid,
        in_specs=[
            pl.BlockSpec((1, l_blk), lambda l, r: (0, l)),       # bias slice
            pl.BlockSpec((r_blk, l_blk), lambda l, r: (r, l)),   # data
        ],
        out_specs=pl.BlockSpec((r_blk, l_blk), lambda l, r: (r, l)),
        compiler_params=pltpu.CompilerParams(
            dimension_semantics=("parallel", "parallel"),
            vmem_limit_bytes=_VMEM_LIMIT_BYTES),
    )(bias_row, x2)


def _chan_blocked_add(x3, bias_col):
    """x3: (N, C, HW), bias_col: (C, 1); out = x3 + bias (per channel), blocked."""
    N, C, HW = x3.shape
    elem = jnp.dtype(x3.dtype).itemsize
    budget = max(1024, _target_block_bytes() // elem)
    hw_pad = _round_up(HW, 128)
    c_pad = _round_up(C, 8)

    if 8 * hw_pad > budget:
        # Huge spatial map: block the lane dim in multiples of 128 (v7x safety).
        hw_blk = max(128, _round_down(budget // 8, 128))
        c_blk = C if C < 8 else 8
        n_blk = 1
    else:
        hw_blk = HW
        c_fit = budget // hw_pad                        # >= 8 here
        if c_fit >= c_pad:
            c_blk = C
            n_blk = min(N, max(1, budget // (c_pad * hw_pad)))   # block over N too
        else:
            c_blk = min(C, max(8, _round_down(c_fit, 8)))
            n_blk = 1

    # Bias block index only depends on the c-block axis -> keep it outermost so
    # the (c_blk, 1) bias stays resident across the inner n / hw steps.
    grid = (pl.cdiv(C, c_blk), pl.cdiv(N, n_blk), pl.cdiv(HW, hw_blk))
    return pl.pallas_call(
        _chan_bias_kernel,
        out_shape=jax.ShapeDtypeStruct((N, C, HW), x3.dtype),
        grid=grid,
        in_specs=[
            pl.BlockSpec((c_blk, 1), lambda cb, nb, hb: (cb, 0)),
            pl.BlockSpec((n_blk, c_blk, hw_blk), lambda cb, nb, hb: (nb, cb, hb)),
        ],
        out_specs=pl.BlockSpec((n_blk, c_blk, hw_blk),
                               lambda cb, nb, hb: (nb, cb, hb)),
        compiler_params=pltpu.CompilerParams(
            dimension_semantics=("parallel", "parallel", "parallel"),
            vmem_limit_bytes=_VMEM_LIMIT_BYTES),
    )(bias_col, x3)


# ---------------------------------------------------------------------------
# Wrapper (mirrors AddBias.forward)
# ---------------------------------------------------------------------------
def add_bias(x, bias_param, *, min_pallas_bytes=_MIN_PALLAS_BYTES):
    """bias_param has shape (C, 1) (nn.Parameter(bias.unsqueeze(1))) or (C,)."""
    bias = jnp.asarray(bias_param).reshape(-1).astype(x.dtype)
    C = bias.shape[0]
    elem = jnp.dtype(x.dtype).itemsize
    total_bytes = x.size * elem

    if x.ndim == 2:
        N, cx = x.shape
        assert cx == C
        bias_row = bias.reshape(1, C)                   # bias.t().view(1, -1)
        if total_bytes < min_pallas_bytes:
            return x + bias_row                         # tiny: let XLA fuse it
        if C < 128:
            # Lane width < 128 -> masked stores; regroup rows so last dim >= 128.
            g = -(-128 // C)
            if N % g == 0:
                out = _row_blocked_add(x.reshape(N // g, g * C),
                                       jnp.tile(bias_row, (1, g)))
                return out.reshape(N, C)
            return x + bias_row                         # ragged grouping: use XLA
        return _row_blocked_add(x, bias_row)

    if x.ndim != 4:
        # PyTorch else-branch assumes NCHW; generic broadcast for other ranks.
        return x + bias.reshape((1, C) + (1,) * (x.ndim - 2))

    N, cx, H, W = x.shape
    assert cx == C
    HW = H * W
    if total_bytes < min_pallas_bytes:
        return x + bias.reshape(1, C, 1, 1)             # bias.t().view(1,-1,1,1)

    if C * HW * elem <= _SMALL_IMAGE_BYTES:
        # Small per-image slab: flatten so one block spans many images and the
        # lane dim is C*HW (dense). Bias row repeats bias[c] HW times.
        L = C * HW
        bias_row = jnp.broadcast_to(bias.reshape(C, 1), (C, HW)).reshape(1, L)
        x2 = x.reshape(N, L)                            # contiguous -> free
        if L < 128:
            g = -(-128 // L)
            if N % g == 0:
                out = _row_blocked_add(x2.reshape(N // g, g * L),
                                       jnp.tile(bias_row, (1, g)))
                return out.reshape(N, C, H, W)
            return x + bias.reshape(1, C, 1, 1)
        return _row_blocked_add(x2, bias_row).reshape(N, C, H, W)

    # Large per-image slab: (n_blk, c_blk, hw_blk) blocks over (N, C, H*W).
    out3 = _chan_blocked_add(x.reshape(N, C, HW), bias.reshape(C, 1))
    return out3.reshape(N, C, H, W)


# ---------------------------------------------------------------------------
# Demo / self-check
# ---------------------------------------------------------------------------
if __name__ == "__main__":
    key = jax.random.PRNGKey(0)
    k_b, k1, k2, k3, k4, k5 = jax.random.split(key, 6)

    # Module-sized 4-D case (N=2, C=4, H=W=16): flattened (N, C*HW) Pallas path.
    N, C, H, W = 2, 4, 16, 16
    bias = jax.random.normal(k_b, (C,), jnp.float32)[:, None]           # (C, 1)
    x4 = jax.random.normal(k1, (N, C, H, W), jnp.float32)
    out4 = jax.block_until_ready(add_bias(x4, bias, min_pallas_bytes=0))
    assert out4.shape == x4.shape
    assert jnp.allclose(out4, x4 + bias.reshape(1, C, 1, 1), atol=1e-6)

    # Larger 4-D case: exercises the (n_blk, c_blk, hw_blk) channel-blocked path.
    N2, C2, H2, W2 = 2, 32, 64, 64
    bias2 = jax.random.normal(k_b, (C2,), jnp.float32)[:, None]
    xb = jax.random.normal(k2, (N2, C2, H2, W2), jnp.float32)
    outb = jax.block_until_ready(add_bias(xb, bias2, min_pallas_bytes=0))
    assert jnp.allclose(outb, xb + bias2.reshape(1, C2, 1, 1), atol=1e-6)

    # 2-D case with small C (latent dim 32): lane-regrouped row-blocked path.
    Nr, Cr = 8, 32
    bias_r = jax.random.normal(k_b, (Cr,), jnp.float32)[:, None]
    x2 = jax.random.normal(k3, (Nr, Cr), jnp.float32)
    out2 = jax.block_until_ready(add_bias(x2, bias_r, min_pallas_bytes=0))
    assert jnp.allclose(out2, x2 + bias_r.reshape(1, Cr), atol=1e-6)

    # 2-D case with C >= 128: direct row-blocked path.
    Nw, Cw = 16, 256
    bias_w = jax.random.normal(k_b, (Cw,), jnp.float32)[:, None]
    xw = jax.random.normal(k4, (Nw, Cw), jnp.float32)
    outw = jax.block_until_ready(add_bias(xw, bias_w, min_pallas_bytes=0))
    assert jnp.allclose(outw, xw + bias_w.reshape(1, Cw), atol=1e-6)

    # Micro-shape: default bytes threshold keeps the plain-XLA (fusable) add.
    xt = jax.random.normal(k5, (2, C), jnp.float32)
    outt = jax.block_until_ready(add_bias(xt, bias))
    assert jnp.allclose(outt, xt + bias.reshape(1, C), atol=1e-6)

    print("KERNEL_OK")
</pallas_src>

<mosaic_0001>
module attributes {stable_mosaic.version = 11 : i64} {
  func.func @_row_bias_kernel(%arg0: i32, %arg1: i32, %arg2: memref<1x1024xf32, #tpu.memory_space<vmem>>, %arg3: memref<2x1024xf32, #tpu.memory_space<vmem>>, %arg4: memref<2x1024xf32, #tpu.memory_space<vmem>>) attributes {dimension_semantics = [#tpu.dimension_semantics<parallel>, #tpu.dimension_semantics<parallel>], iteration_bounds = array<i64: 1, 1>, scalar_prefetch = 0 : i64, scratch_operands = 0 : i64, tpu.core_type = #tpu.core_type<tc>, window_params = [{transform_indices = @transform_0, window_bounds = array<i64: 1, 1024>}, {transform_indices = @transform_1, window_bounds = array<i64: 2, 1024>}, {transform_indices = @transform_2, window_bounds = array<i64: 2, 1024>}]} {
    %c0 = arith.constant 0 : index
    %c0_0 = arith.constant 0 : index
    %0 = vector.load %arg3[%c0, %c0_0] : memref<2x1024xf32, #tpu.memory_space<vmem>>, vector<2x1024xf32>
    %c0_1 = arith.constant 0 : index
    %c0_2 = arith.constant 0 : index
    %1 = vector.load %arg2[%c0_1, %c0_2] : memref<1x1024xf32, #tpu.memory_space<vmem>>, vector<1x1024xf32>
    %2 = vector.broadcast %1 : vector<1x1024xf32> to vector<2x1024xf32>
    %3 = arith.addf %0, %2 : vector<2x1024xf32>
    %c0_3 = arith.constant 0 : index
    %c0_4 = arith.constant 0 : index
    %4 = vector.load %arg4[%c0_3, %c0_4] : memref<2x1024xf32, #tpu.memory_space<vmem>>, vector<2x1024xf32>
    tpu.vector_store %arg4[%c0_3, %c0_4], %3 {strides = array<i32>} : memref<2x1024xf32, #tpu.memory_space<vmem>>, vector<2x1024xf32>,
    return
  }
  func.func @transform_0(%arg0: i32, %arg1: i32) -> (i32, i32) {
    %c0_i32 = arith.constant 0 : i32
    %c0_i32_0 = arith.constant 0 : i32
    return %c0_i32, %arg0 : i32, i32
  }
  func.func @transform_1(%arg0: i32, %arg1: i32) -> (i32, i32) {
    %c0_i32 = arith.constant 0 : i32
    return %arg1, %arg0 : i32, i32
  }
  func.func @transform_2(%arg0: i32, %arg1: i32) -> (i32, i32) {
    %c0_i32 = arith.constant 0 : i32
    return %arg1, %arg0 : i32, i32
  }
}

</mosaic_0001>

<bundles_post_ra>
// kernel: tpu_custom_call.1
= control target key start
LH: loop header
LB: loop body
LE: loop exit
PB: predicated region body
PF: predicated region fallthrough
CT: control target
= control target key end

     0   :  { %7 = vsyncpa [#allocation3], 0  ;;  %s259_s0 = inlined_call_operand.hbm [shape: f32[1,1024], index: 0, kind: input, shape index: {}]   ;;  %s260_s1 = inlined_call_operand.hbm [shape: f32[2,1024], index: 1, kind: input, shape index: {}]   ;;  %s261_s2 = inlined_call_operand.hbm [shape: f32[2,1024], index: 2, kind: output, shape index: {}]  }
   0x1   :  { %8 = vsyncpa [#allocation6], 0 }
   0x2   :  { %9 = vsyncpa [#allocation4], 0  ;;  %s204_s9 = smov [#allocation2]   ;;  %s205_s11 = smov [#allocation5]  }
   0x3   :  { %s16_s10 = sshll.u32 %s204_s9, 4  ;;  %s26_s12 = sshll.u32 %s205_s11, 4  ;;  %s17_s10 = int_to_ptr.vmem [resolvable:$true] %s16_s10  ;;  %s27_s12 = int_to_ptr.vmem [resolvable:$true] %s26_s12 }
   0x4   :  { %s132_s15 = scalar_lea.hbm %s259_s0, 128 }
   0x5   :  { %p133_p0 = scmp.ne.s32.totalorder %s259_s0, %s132_s15  ;;  %p136_p1 = scmp.lt.u32.totalorder %s132_s15, %s259_s0 }
   0x7   :  { %p138_p2 = pnand %p136_p1, %p133_p0 }
   0x9   :  { %141 = shalt.err (!%p138_p2)
}
   0xa   :  { %s142_s20 = scalar_lea.vmem %s17_s10, 128  ;;  %p147_p4 = scmp.lt.s32.totalorder %s17_s10, %s17_s10 }
   0xb   :  { %p143_p3 = scmp.ne.s32.totalorder %s17_s10, %s142_s20  ;;  %p148_p5 = scmp.lt.s32.totalorder %s142_s20, %s142_s20 }
   0xd   :  { %p149_p6 = por %p148_p5, %p147_p4 }
   0xf   :  { %p150_p7 = pnand %p149_p6, %p143_p3 }
  0x11   :  { %153 = shalt.err (!%p150_p7)
}
  0x12   :  { %19 = dma.hbm_to_vmem [thread:$0]  %s259_s0, 128, %s17_s10, [#allocation3]  }
  0x13   :  { %s154_s25 = scalar_lea.hbm %s260_s1, 256 }
  0x14   :  { %p155_p8 = scmp.ne.s32.totalorder %s260_s1, %s154_s25  ;;  %p158_p9 = scmp.lt.u32.totalorder %s154_s25, %s260_s1 }
  0x16   :  { %p160_p10 = pnand %p158_p9, %p155_p8 }
  0x18   :  { %163 = shalt.err (!%p160_p10)
}
  0x19   :  { %s164_s30 = scalar_lea.vmem %s27_s12, 256  ;;  %p169_p12 = scmp.lt.s32.totalorder %s27_s12, %s27_s12 }
  0x1a   :  { %p165_p11 = scmp.ne.s32.totalorder %s27_s12, %s164_s30  ;;  %p170_p13 = scmp.lt.s32.totalorder %s164_s30, %s164_s30 }
  0x1c   :  { %p171_p0 = por %p170_p13, %p169_p12 }
  0x1e   :  { %p172_p1 = pnand %p171_p0, %p165_p11 }
  0x20   :  { %175 = shalt.err (!%p172_p1)
}
  0x21   :  { %29 = dma.hbm_to_vmem [thread:$0]  %s260_s1, 256, %s27_s12, [#allocation6]  }
  0x22   :  { %198 = dma.done.wait [#allocation3], 128  }
  0x23   :  { %199 = vsyncadd [#allocation3], 4294967168 }
  0x24   :  { %200 = dma.done.wait [#allocation6], 256  }
  0x25   :  { %201 = vsyncadd [#allocation6], 4294967040  ;;  %v40_v0 = vlaneseq  ;;  %v206_v1 = vmov 1983009808   ;;  %v38_v13 = vld [vmem:[#allocation2] sm:$0xff]  ;;  %v36_v29 = vld [vmem:[#allocation5] sm:$0xff] }
  0x26   :  { %v75_v2 = vunpack.c.l.s4 %v206_v1  ;;  %v37_v33 = vld [vmem:[#allocation5 + $0x8] sm:$0xff]  ;;  %s207_s1 = smov [#allocation7]  }
  0x27   :  { %v41_v3 = vshrl.u32 %v40_v0, 7  ;;  %s118_s4 = sshll.u32 %s207_s1, 4  ;;  %s119_s4 = int_to_ptr.vmem [resolvable:$true] %s118_s4 }
  0x28   :  { %v76_v4 = vunpack.c.0.s8 %v75_v2  ;;  %s176_s5 = scalar_lea.vmem %s119_s4, 256  ;;  %p181_p3 = scmp.lt.s32.totalorder %s119_s4, %s119_s4 }
  0x29   :  { %v42_v5 = vsub.s32 0, %v41_v3  ;;  %v46_v6 = vsub.s32 1, %v41_v3  ;;  %v50_v7 = vsub.s32 2, %v41_v3  ;;  %v54_v8 = vsub.s32 3, %v41_v3  ;;  %p177_p2 = scmp.ne.s32.totalorder %s119_s4, %s176_s5  ;;  %p182_p4 = scmp.lt.s32.totalorder %s176_s5, %s176_s5 }
  0x2a   :  { %v58_v9 = vsub.s32 4, %v41_v3  ;;  %v62_v10 = vsub.s32 5, %v41_v3  ;;  %v66_v11 = vsub.s32 6, %v41_v3  ;;  %v70_v12 = vsub.s32 7, %v41_v3 }
  0x2b   :  { %v79_v14 = vsub.s32 %v76_v4, %v41_v3  ;;  %v43_v15 = vrot.slane %v38_v13, %v42_v5  ;;  %v47_v16 = vrot.slane %v38_v13, %v46_v6  ;;  %v51_v17 = vrot.slane %v38_v13, %v50_v7  ;;  %p183_p5 = por %p182_p4, %p181_p3 }
  0x2c   :  { %v55_v18 = vrot.slane %v38_v13, %v54_v8  ;;  %v59_v19 = vrot.slane %v38_v13, %v58_v9  ;;  %v63_v20 = vrot.slane %v38_v13, %v62_v10  ;;  %v67_v21 = vrot.slane %v38_v13, %v66_v11 }
  0x2d   :  { %v71_v22 = vrot.slane %v38_v13, %v70_v12  ;;  %v72_v23 = vcombine.low %v43_v15, %v47_v16  ;;  %p184_p6 = pnand %p183_p5, %p177_p2 }
  0x2e   :  { %v73_v24 = vcombine.low %v51_v17, %v55_v18  ;;  %v89_v25 = vcombine.low %v59_v19, %v63_v20 }
  0x2f   :  { %v90_v26 = vcombine.low %v67_v21, %v71_v22  ;;  %v80_v27 = vrot.slane %v72_v23, %v79_v14 }
  0x30   :  { %v87_v28 = vrot.slane %v73_v24, %v79_v14  ;;  %v97_v30 = vrot.slane %v89_v25, %v79_v14 }
  0x31   :  { %v104_v31 = vrot.slane %v90_v26, %v79_v14 }
  0x32   :  { %v88_v32 = vcombine.low %v80_v27, %v87_v28 }
  0x33   :  { %v105_v34 = vcombine.low %v97_v30, %v104_v31 }
  0x34   :  { %v108_v35 = vadd.f32 %v88_v32, %v36_v29 }
  0x35   :  { %v109_v36 = vadd.f32 %v105_v34, %v37_v33 }
  0x36   :  { %110 = vst [vmem:[#allocation7] sm:$0xff] %v108_v35 }
  0x37   :  { %111 = vst [vmem:[#allocation7 + $0x8] sm:$0xff] %v109_v36 }
  0x38   :  { %187 = shalt.err (!%p184_p6)
}
  0x39   :  { %s188_s8 = scalar_lea.hbm %s261_s2, 256 }
  0x3a   :  { %p189_p7 = scmp.ne.s32.totalorder %s261_s2, %s188_s8  ;;  %p192_p8 = scmp.lt.u32.totalorder %s188_s8, %s261_s2 }
  0x3c   :  { %p194_p9 = pnand %p192_p8, %p189_p7 }
  0x3e   :  { %197 = shalt.err (!%p194_p9)
}
  0x3f   :  { %121 = dma.vmem_to_hbm [thread:$0]  %s119_s4, 256, %s261_s2, [#allocation4]  }
  0x40   :  { %202 = dma.done.wait [#allocation4], 256  }
  0x41   :  { %203 = vsyncadd [#allocation4], 4294967040 }
  0x42   :  { %125 = vsyncpa [#allocation3], 1 }
  0x43   :  { %126 = vsyncpa [#allocation6], 1 }
  0x44   :  { %127 = vsyncpa [#allocation4], 1 }

</bundles_post_ra>
